<compile_context>
chip_gen: v7x
topology: tpu7x:2x2x1
jax: 0.10.0
libtpu: 0.0.40
codegen_flags: <defaults>
</compile_context>

<pallas_src>
import functools

import jax
import jax.numpy as jnp
from jax import lax
from jax.experimental import pallas as pl
from jax.experimental.pallas import tpu as pltpu


def _convlstm_gate_kernel(col_ref, w_ref, b_ref, c_ref, hc_ref, *, Ch):
    # col_ref: (M_TILE, K)     bf16 im2col patches (K = KH*KW*(Cin+Ch))
    # w_ref:   (K, 4*Ch)       bf16 conv weight, flattened HWIO
    # b_ref:   (1, 4*Ch)       f32 bias
    # c_ref:   (M_TILE, Ch)    f32 previous cell state (spatially flattened)
    # hc_ref:  (M_TILE, 2*Ch)  output slab [h_cur | c_cur]
    acc = jnp.dot(col_ref[...], w_ref[...],
                  preferred_element_type=jnp.float32)
    acc = acc + b_ref[...]

    # Full-width sigmoid over all 4*Ch lanes (single wide EUP pass); only the
    # g gate needs a separate (narrow) tanh.
    sig = jax.nn.sigmoid(acc)
    i = sig[:, 0 * Ch:1 * Ch]
    f = sig[:, 1 * Ch:2 * Ch]
    o = sig[:, 2 * Ch:3 * Ch]
    g = jnp.tanh(acc[:, 3 * Ch:4 * Ch])

    c_prev = c_ref[...].astype(jnp.float32)
    c_cur = f * c_prev + i * g
    h_cur = o * jnp.tanh(c_cur)

    hc_ref[...] = jnp.concatenate([h_cur, c_cur], axis=-1).astype(hc_ref.dtype)


def convlstm_cell(x, h_prev, c_prev, weight, bias, kernel_size, *, m_tile=128):
    """x: (B,H,W,Cin), h_prev/c_prev: (B,H,W,Ch),
       weight: (KH,KW,Cin+Ch,4*Ch), bias: (4*Ch,)."""
    B, H, W, Cin = x.shape
    Ch = h_prev.shape[-1]
    KH, KW = kernel_size
    ph, pw = KH // 2, KW // 2
    C = Cin + Ch
    K = KH * KW * C
    M = B * H * W

    # ---- wrapper-side glue (HBM layout plumbing, cheap at these sizes) ----
    combined = jnp.concatenate([x, h_prev], axis=-1)
    padded = jnp.pad(combined, ((0, 0), (ph, ph), (pw, pw), (0, 0)))
    # im2col: (B, H, W, KH*KW*C) with (kh, kw, c) fastest-varying order,
    # matching weight.reshape(KH*KW*C, 4*Ch).
    taps = [padded[:, kh:kh + H, kw:kw + W, :]
            for kh in range(KH) for kw in range(KW)]
    col = jnp.concatenate(taps, axis=-1).reshape(M, K).astype(jnp.bfloat16)
    w = weight.reshape(K, 4 * Ch).astype(jnp.bfloat16)
    b = bias.reshape(1, 4 * Ch).astype(jnp.float32)
    c_flat = c_prev.reshape(M, Ch).astype(jnp.float32)

    # Pad M up to a multiple of the tile (padding rows are discarded below).
    Mp = pl.cdiv(M, m_tile) * m_tile
    if Mp != M:
        col = jnp.pad(col, ((0, Mp - M), (0, 0)))
        c_flat = jnp.pad(c_flat, ((0, Mp - M), (0, 0)))

    kernel = functools.partial(_convlstm_gate_kernel, Ch=Ch)

    hc = pl.pallas_call(
        kernel,
        out_shape=jax.ShapeDtypeStruct((Mp, 2 * Ch), x.dtype),
        grid=(Mp // m_tile,),
        in_specs=[
            pl.BlockSpec((m_tile, K), lambda m: (m, 0)),
            pl.BlockSpec((K, 4 * Ch), lambda m: (0, 0)),   # weight resident
            pl.BlockSpec((1, 4 * Ch), lambda m: (0, 0)),   # bias resident
            pl.BlockSpec((m_tile, Ch), lambda m: (m, 0)),
        ],
        out_specs=pl.BlockSpec((m_tile, 2 * Ch), lambda m: (m, 0)),
        compiler_params=pltpu.CompilerParams(
            dimension_semantics=("parallel",)),
    )(col, w, b, c_flat)

    hc = hc[:M]
    h_cur = hc[:, :Ch].reshape(B, H, W, Ch)
    c_cur = hc[:, Ch:].reshape(B, H, W, Ch)
    return h_cur, c_cur


def convlstm_cell_ref(x, h_prev, c_prev, weight, bias, kernel_size):
    """Pure-JAX reference (same math as the PyTorch module, NHWC/HWIO)."""
    Ch = h_prev.shape[-1]
    combined = jnp.concatenate([x, h_prev], axis=-1)
    out = lax.conv_general_dilated(
        combined, weight, window_strides=(1, 1), padding="SAME",
        dimension_numbers=("NHWC", "HWIO", "NHWC")) + bias
    cc_i, cc_f, cc_o, cc_g = jnp.split(out, 4, axis=-1)
    i = jax.nn.sigmoid(cc_i)
    f = jax.nn.sigmoid(cc_f)
    o = jax.nn.sigmoid(cc_o)
    g = jnp.tanh(cc_g)
    c_cur = f * c_prev + i * g
    h_cur = o * jnp.tanh(c_cur)
    return h_cur, c_cur


if __name__ == "__main__":
    # Module config (matches ConvLSTMCell.__init__): in_size=(16,16),
    # in_channels=4, h_channels=32, kernel_size=(3,3), bias=True.
    B, H, W = 2, 16, 16
    Cin, Ch = 4, 32
    KH, KW = 3, 3
    C = Cin + Ch

    key = jax.random.PRNGKey(0)
    kx, kh, kc, kw_, kb = jax.random.split(key, 5)

    x = jax.random.normal(kx, (B, H, W, Cin), jnp.float32)
    h_prev = jax.random.normal(kh, (B, H, W, Ch), jnp.float32)
    c_prev = jax.random.normal(kc, (B, H, W, Ch), jnp.float32)

    fan_in = C * KH * KW
    bound = 1.0 / jnp.sqrt(jnp.float32(fan_in))
    weight = jax.random.uniform(kw_, (KH, KW, C, 4 * Ch), jnp.float32,
                                minval=-bound, maxval=bound)
    bias = jax.random.uniform(kb, (4 * Ch,), jnp.float32,
                              minval=-bound, maxval=bound)

    h_cur, c_cur = convlstm_cell(x, h_prev, c_prev, weight, bias, (KH, KW))
    jax.block_until_ready((h_cur, c_cur))

    h_ref, c_ref = convlstm_cell_ref(x, h_prev, c_prev, weight, bias, (KH, KW))
    assert jnp.allclose(h_cur, h_ref, atol=2e-2, rtol=2e-2), \
        float(jnp.max(jnp.abs(h_cur - h_ref)))
    assert jnp.allclose(c_cur, c_ref, atol=2e-2, rtol=2e-2), \
        float(jnp.max(jnp.abs(c_cur - c_ref)))

    print("KERNEL_OK")
</pallas_src>

<mosaic_0001>
module attributes {stable_mosaic.version = 11 : i64} {
  func.func @_convlstm_gate_kernel(%arg0: i32, %arg1: memref<128x324xbf16, #tpu.memory_space<vmem>>, %arg2: memref<324x128xbf16, #tpu.memory_space<vmem>>, %arg3: memref<1x128xf32, #tpu.memory_space<vmem>>, %arg4: memref<128x32xf32, #tpu.memory_space<vmem>>, %arg5: memref<128x64xf32, #tpu.memory_space<vmem>>) attributes {dimension_semantics = [#tpu.dimension_semantics<parallel>], iteration_bounds = array<i64: 4>, scalar_prefetch = 0 : i64, scratch_operands = 0 : i64, tpu.core_type = #tpu.core_type<tc>, window_params = [{transform_indices = @transform_0, window_bounds = array<i64: 128, 324>}, {pipeline_mode = #tpu.pipeline_mode<synchronous>, transform_indices = @transform_1, window_bounds = array<i64: 324, 128>}, {pipeline_mode = #tpu.pipeline_mode<synchronous>, transform_indices = @transform_2, window_bounds = array<i64: 1, 128>}, {transform_indices = @transform_3, window_bounds = array<i64: 128, 32>}, {transform_indices = @transform_4, window_bounds = array<i64: 128, 64>}]} {
    %c0 = arith.constant 0 : index
    %c0_0 = arith.constant 0 : index
    %0 = vector.load %arg1[%c0, %c0_0] : memref<128x324xbf16, #tpu.memory_space<vmem>>, vector<128x324xbf16>
    %c0_1 = arith.constant 0 : index
    %c0_2 = arith.constant 0 : index
    %1 = vector.load %arg2[%c0_1, %c0_2] : memref<324x128xbf16, #tpu.memory_space<vmem>>, vector<324x128xbf16>
    %cst = arith.constant dense<0.000000e+00> : vector<128x128xf32>
    %2 = tpu.matmul %0, %1, %cst {dimension_numbers = #tpu.dot_dimension_numbers<[1], [0], [0], [1], [0, 0, 1, 1], [], []>} : vector<128x324xbf16>, vector<324x128xbf16>, vector<128x128xf32> -> vector<128x128xf32>
    %c0_3 = arith.constant 0 : index
    %c0_4 = arith.constant 0 : index
    %3 = vector.load %arg3[%c0_3, %c0_4] : memref<1x128xf32, #tpu.memory_space<vmem>>, vector<1x128xf32>
    %4 = vector.broadcast %3 : vector<1x128xf32> to vector<128x128xf32>
    %5 = arith.addf %2, %4 : vector<128x128xf32>
    %6 = arith.negf %5 : vector<128x128xf32>
    %7 = math.exp %6 : vector<128x128xf32>
    %cst_5 = arith.constant 1.000000e+00 : f32
    %8 = vector.broadcast %cst_5 : f32 to vector<128x128xf32>
    %9 = arith.addf %8, %7 : vector<128x128xf32>
    %10 = arith.divf %8, %9 : vector<128x128xf32>
    %11 = vector.extract_strided_slice %10 {offsets = [0, 0], sizes = [128, 32], strides = [1, 1]} : vector<128x128xf32> to vector<128x32xf32>
    %12 = vector.extract_strided_slice %10 {offsets = [0, 32], sizes = [128, 32], strides = [1, 1]} : vector<128x128xf32> to vector<128x32xf32>
    %13 = vector.extract_strided_slice %10 {offsets = [0, 64], sizes = [128, 32], strides = [1, 1]} : vector<128x128xf32> to vector<128x32xf32>
    %14 = vector.extract_strided_slice %5 {offsets = [0, 96], sizes = [128, 32], strides = [1, 1]} : vector<128x128xf32> to vector<128x32xf32>
    %15 = math.tanh %14 : vector<128x32xf32>
    %c0_6 = arith.constant 0 : index
    %c0_7 = arith.constant 0 : index
    %16 = vector.load %arg4[%c0_6, %c0_7] : memref<128x32xf32, #tpu.memory_space<vmem>>, vector<128x32xf32>
    %17 = arith.mulf %12, %16 : vector<128x32xf32>
    %18 = arith.mulf %11, %15 : vector<128x32xf32>
    %19 = arith.addf %17, %18 : vector<128x32xf32>
    %20 = math.tanh %19 : vector<128x32xf32>
    %21 = arith.mulf %13, %20 : vector<128x32xf32>
    %22 = tpu.concatenate %21, %19 in 1 : vector<128x32xf32>, vector<128x32xf32> -> vector<128x64xf32>
    %c0_8 = arith.constant 0 : index
    %c0_9 = arith.constant 0 : index
    %23 = vector.load %arg5[%c0_8, %c0_9] : memref<128x64xf32, #tpu.memory_space<vmem>>, vector<128x64xf32>
    tpu.vector_store %arg5[%c0_8, %c0_9], %22 {strides = array<i32>} : memref<128x64xf32, #tpu.memory_space<vmem>>, vector<128x64xf32>,
    return
  }
  func.func @transform_0(%arg0: i32) -> (i32, i32) {
    %c0_i32 = arith.constant 0 : i32
    %c0_i32_0 = arith.constant 0 : i32
    return %arg0, %c0_i32 : i32, i32
  }
  func.func @transform_1(%arg0: i32) -> (i32, i32) {
    %c0_i32 = arith.constant 0 : i32
    %c0_i32_0 = arith.constant 0 : i32
    %c0_i32_1 = arith.constant 0 : i32
    return %c0_i32, %c0_i32_0 : i32, i32
  }
  func.func @transform_2(%arg0: i32) -> (i32, i32) {
    %c0_i32 = arith.constant 0 : i32
    %c0_i32_0 = arith.constant 0 : i32
    %c0_i32_1 = arith.constant 0 : i32
    return %c0_i32, %c0_i32_0 : i32, i32
  }
  func.func @transform_3(%arg0: i32) -> (i32, i32) {
    %c0_i32 = arith.constant 0 : i32
    %c0_i32_0 = arith.constant 0 : i32
    return %arg0, %c0_i32 : i32, i32
  }
  func.func @transform_4(%arg0: i32) -> (i32, i32) {
    %c0_i32 = arith.constant 0 : i32
    %c0_i32_0 = arith.constant 0 : i32
    return %arg0, %c0_i32 : i32, i32
  }
}

</mosaic_0001>

<bundles_post_ra>
// kernel: tpu_custom_call.1
= control target key start
LH: loop header
LB: loop body
LE: loop exit
PB: predicated region body
PF: predicated region fallthrough
CT: control target
= control target key end

     0   :  { %s1817_s15 = smov 0   ;;  %s2358_s0 = inlined_call_operand.vmem [shape: bf16[512,324], index: 0, kind: input, shape index: {}]   ;;  %s2359_s1 = inlined_call_operand.vmem [shape: bf16[324,128], index: 1, kind: input, shape index: {}]   ;;  %s2360_s2 = inlined_call_operand.vmem [shape: f32[1,128], index: 2, kind: input, shape index: {}]   ;;  %s2361_s3 = inlined_call_operand.vmem [shape: f32[512,32], index: 3, kind: input, shape index: {}]   ;;  %s2362_s4 = inlined_call_operand.vmem [shape: f32[512,64], index: 4, kind: output, shape index: {}]  }
   0x1 LB: > { %s1403_s16 = sadd.s32 4294967295, %s1788_s15   ;;  %p1407_p0 = scmp.ge.s32.totalorder %s1788_s15, 1  ;;  %s1788_s15 = sphi %s1817_s15, %s14_s15  }
   0x2   : > { %p175_p1 = scmp.lt.s32.totalorder %s1788_s15, 5 }
   0x4   : > { %p176_p2 = pnand %p1407_p0, %p175_p1 }
   0x5   : > { %v1601_v0 = vld [vmem:[%s2359_s1 + $0x40] sm:$0xff] (!%p176_p2)   ;;  %v1603_v2 = vld [vmem:[%s2359_s1 + $0x48] sm:$0xff] (!%p176_p2)   ;;  %s1408_s25 = sshll.u32 (!%p176_p2), %s1403_s16, 4  ;;  %v1605_v4 = vld [vmem:[%s2359_s1 + $0x50] sm:$0xff] (!%p176_p2)   ;;  %vm575_vm0 = vcmask (!%p176_p2), 1041408   ;;  %vm550_vm1 = vcmask (!%p176_p2), 556032  }
   0x6   : > { %179 = sbr.rel (%p176_p2) target bundleno = 805 (0x325), region = 36  ;;  %v1602_v1 = vld [vmem:[%s2359_s1] sm:$0xff] (!%p176_p2)   ;;  %1486 = vmatprep.subr.bf16.mxu0 (!%p176_p2), %v1601_v0  ;;  %v1604_v3 = vld [vmem:[%s2359_s1 + $0x8] sm:$0xff] (!%p176_p2)   ;;  %p208_p3 = scmp.lt.s32.totalorder (!%p176_p2), %s1408_s25, 63  ;;  %v1606_v5 = vld [vmem:[%s2359_s1 + $0x10] sm:$0xff] (!%p176_p2)   ;;  %vm1301_vm2 = vcmask (!%p176_p2), 261120  }
   0x7   : > { %1487 = vmatpush3.bf16.msra.mxu0 (!%p176_p2), %v1602_v1  ;;  %v1607_v6 = vld [vmem:[%s2359_s1 + $0x58] sm:$0xff] (!%p176_p2)   ;;  %v1610_v7 = vld [vmem:[%s2359_s1 + $0x80] sm:$0xff] (!%p176_p2)   ;;  %v1613_v10 = vld [vmem:[%s2359_s1 + $0x88] sm:$0xff] (!%p176_p2)   ;;  %s1790_s19 = smov (!%p176_p2), 32   ;;  %s1791_s22 = smov (!%p176_p2), 64   ;;  %vm1318_vm3 = vcmask (!%p176_p2), 523264  }
   0x8   : > { %1488 = vmatprep.subr.bf16.mxu0 (!%p176_p2), %v1603_v2  ;;  %v1608_v8 = vld [vmem:[%s2359_s1 + $0x18] sm:$0xff] (!%p176_p2)   ;;  %v1609_v9 = vld [vmem:[%s2359_s1 + $0x60] sm:$0xff] (!%p176_p2)   ;;  %1563 = vmatprep.subr.bf16.mxu1 (!%p176_p2), %v1610_v7  ;;  %v1616_v12 = vld [vmem:[%s2359_s1 + $0x90] sm:$0xff] (!%p176_p2)  }
   0x9   : > { %1564 = vmatpush3.bf16.msra.mxu1 (!%p176_p2), %v1610_v7  ;;  %v1611_v11 = vld [vmem:[%s2359_s1 + $0x20] sm:$0xff] (!%p176_p2)   ;;  %v1612_v13 = vld [vmem:[%s2359_s1 + $0x68] sm:$0xff] (!%p176_p2)   ;;  %v1619_v14 = vld [vmem:[%s2359_s1 + $0x98] sm:$0xff] (!%p176_p2)  }
   0xa   : > { %1565 = vmatprep.subr.bf16.mxu1 (!%p176_p2), %v1613_v10  ;;  %v1614_v15 = vld [vmem:[%s2359_s1 + $0x28] sm:$0xff] (!%p176_p2)   ;;  %v1615_v16 = vld [vmem:[%s2359_s1 + $0x70] sm:$0xff] (!%p176_p2)   ;;  %v1624_v19 = vld [vmem:[%s2359_s1 + $0xa0] ss:$0 sps:$4 sm:$0x33] (!%p176_p2)  }
   0xb   : > { %1489 = vmatpush3.bf16.msra.mxu0 (!%p176_p2), %v1604_v3  ;;  %v1617_v17 = vld [vmem:[%s2359_s1 + $0x30] sm:$0xff] (!%p176_p2)   ;;  %v1618_v21 = vld [vmem:[%s2359_s1 + $0x78] sm:$0xff] (!%p176_p2)   ;;  %v577_v22 = vsel (!%p176_p2), %vm575_vm0, %v1624_v19, 0  ;;  %v1943_v54 = vld [vmem:[%s2360_s2] ss:$0 sm:$0xff] (!%p176_p2) }
   0xc   : > { %1490 = vmatprep.subr.bf16.mxu0 (!%p176_p2), %v1605_v4  ;;  %v1620_v23 = vld [vmem:[%s2359_s1 + $0x38] sm:$0xff] (!%p176_p2)  }
   0xd   : > { %s2364_s25 = smov (!%p208_p3, %s1408_s25), 63  ;;  %1566 = vmatpush3.bf16.msra.mxu1 %v1613_v10 }
   0xe   : > { %s1590_s17 = smul.u32 12, %s2364_s25  ;;  %1567 = vmatprep.subr.bf16.mxu1 %v1616_v12  ;;  %s1411_s14 = sshll.u32 %s2364_s25, 3 }
   0xf   : > { %1491 = vmatpush3.bf16.msra.mxu0 %v1606_v5  ;;  %s1913_s18 = scalar_lea.vmem %s2361_s3, %s1411_s14  ;;  %s2289_s26 = scalar_lea.vmem %s2362_s4, %s1411_s14 }
  0x10   : > { %1492 = vmatprep.subr.bf16.mxu0 %v1607_v6  ;;  %s1876_s27 = scalar_lea.vmem %s2358_s0, %s1590_s17  ;;  %v885_v32 = vld [vmem:[%s1913_s18] sm:$0xff]  ;;  %v886_v33 = vld [vmem:[%s1913_s18 + $0x8] sm:$0xff] }
  0x11   : > { %1568 = vmatpush3.bf16.msra.mxu1 %v1616_v12  ;;  %v1623_v18 = vld [vmem:[%s1876_s27 + $0x4] ss:$12 sps:$4 sm:$0xff]   ;;  %v1625_v20 = vld [vmem:[%s1876_s27 + $0x8] ss:$12 sps:$4 sm:$0xff]   ;;  %v1626_v24 = vld [vmem:[%s1876_s27 + $0x20] ss:$12 sps:$4 sm:$0xff]   ;;  %917 = vrot.lane.b32.xlu0 %v885_v32, %s1790_s19 }
  0x12   : > { %1569 = vmatprep.subr.bf16.mxu1 %v1619_v14  ;;  %611 = vmatprep.mubr.bf16.mxu0 %v1623_v18  ;;  %v1633_v25 = vld [vmem:[%s1876_s27 + $0x38] ss:$12 sps:$4 sm:$0xff]   ;;  %v1621_v26 = vld [vmem:[%s1876_s27] ss:$12 sps:$4 sm:$0xff]   ;;  %v1627_v27 = vld [vmem:[%s1876_s27 + $0x1c] ss:$12 sps:$4 sm:$0xff]  }
  0x13   : > { %1493 = vmatpush3.bf16.msra.mxu0 %v1608_v8  ;;  %1573 = vmatprep.mubr.msk.bf16.mxu1 %vm550_vm1, %v1625_v20  ;;  %v1634_v28 = vld [vmem:[%s1876_s27 + $0x50] ss:$12 sps:$4 sm:$0xff]   ;;  %v1641_v29 = vld [vmem:[%s1876_s27 + $0x68] ss:$12 sps:$4 sm:$0xff]   ;;  %v1629_v30 = vld [vmem:[%s1876_s27 + $0x18] ss:$12 sps:$4 sm:$0xff]  }
  0x14   : > { %1494 = vmatprep.subr.bf16.mxu0 %v1609_v9  ;;  %v1630_v31 = vld [vmem:[%s1876_s27 + $0x34] ss:$12 sps:$4 sm:$0xff]   ;;  %919 = vrot.lane.b32.xlu1 %v886_v33, %s1790_s19  ;;  %v1649_v35 = vld [vmem:[%s1876_s27 + $0x98] ss:$12 sps:$4 sm:$0xff]   ;;  %v1632_v36 = vld [vmem:[%s1876_s27 + $0x30] ss:$12 sps:$4 sm:$0xff]  }
  0x15   : > { %1570 = vmatpush3.bf16.msra.mxu1 %v1619_v14  ;;  %v1642_v34 = vld [vmem:[%s1876_s27 + $0x80] ss:$12 sps:$4 sm:$0xff]   ;;  %v1650_v38 = vld [vmem:[%s1876_s27 + $0xb0] ss:$12 sps:$4 sm:$0xff]   ;;  %v1637_v39 = vld [vmem:[%s1876_s27 + $0x48] ss:$12 sps:$4 sm:$0xff]  }
  0x16   : > { %1589 = vmatprep.subr.msk.bf16.mxu1 %vm575_vm0, %v1624_v19  ;;  %v1635_v37 = vld [vmem:[%s1876_s27 + $0x4c] ss:$12 sps:$4 sm:$0xff]   ;;  %v1638_v40 = vld [vmem:[%s1876_s27 + $0x64] ss:$12 sps:$4 sm:$0xff]   ;;  %v1643_v42 = vld [vmem:[%s1876_s27 + $0x7c] ss:$12 sps:$4 sm:$0xff]  }
  0x17   : > { %1495 = vmatpush3.bf16.msra.mxu0 %v1611_v11  ;;  %v1640_v41 = vld [vmem:[%s1876_s27 + $0x60] ss:$12 sps:$4 sm:$0xff]   ;;  %v1645_v43 = vld [vmem:[%s1876_s27 + $0x78] ss:$12 sps:$4 sm:$0xff]   ;;  %v1648_v45 = vld [vmem:[%s1876_s27 + $0x90] ss:$12 sps:$4 sm:$0xff]  }
  0x18   : > { %1496 = vmatprep.subr.bf16.mxu0 %v1612_v13  ;;  %v1646_v44 = vld [vmem:[%s1876_s27 + $0x94] ss:$12 sps:$4 sm:$0xff]   ;;  %v1651_v46 = vld [vmem:[%s1876_s27 + $0xac] ss:$12 sps:$4 sm:$0xff]  }
  0x19   : > { %1572 = vmatpush3.bf16.msra.mxu1 %v577_v22  ;;  %v1653_v47 = vld [vmem:[%s1876_s27 + $0xa8] ss:$12 sps:$4 sm:$0xff]  }
  0x1b   : > { %1497 = vmatpush3.bf16.msra.mxu0 %v1614_v15 }
  0x1c   : > { %1498 = vmatprep.subr.bf16.mxu0 %v1615_v16  ;;  %1574 = vmatmul.mubr.msk.bf16.vlgmr.msra.gmra.mrb[0].mxu1 %vm550_vm1, %v1626_v24 }
  0x1d   : > { %1577 = vmatprep.mubr.msk.bf16.mxu1 %vm550_vm1, %v1633_v25 }
  0x1f   : > { %1499 = vmatpush3.bf16.msra.mxu0 %v1617_v17 }
  0x20   : > { %1500 = vmatprep.subr.bf16.mxu0 %v1618_v21 }
  0x23   : > { %1501 = vmatpush3.bf16.msra.mxu0 %v1620_v23 }
  0x24   : > { %1578 = vmatmul.mubr.msk.bf16.gmra.mrb[4].mxu1 %vm550_vm1, %v1634_v28 }
  0x25   : > { %1581 = vmatprep.mubr.msk.bf16.mxu1 %vm550_vm1, %v1641_v29 }
  0x26   : > { %612 = vmatmul.mubr.bf16.vlgmr.msra.gmra.mrb[0].mxu0 %v1621_v26 }
  0x27   : > { %619 = vmatprep.mubr.bf16.mxu0 %v1627_v27 }
  0x2c   : > { %1582 = vmatmul.mubr.msk.bf16.gmra.mrb[8].mxu1 %vm550_vm1, %v1642_v34 }
  0x2d   : > { %1585 = vmatprep.mubr.msk.bf16.mxu1 %vm550_vm1, %v1649_v35 }
  0x2e   : > { %620 = vmatmul.mubr.bf16.gmra.mrb[4].mxu0 %v1629_v30 }
  0x2f   : > { %627 = vmatprep.mubr.bf16.mxu0 %v1630_v31 }
  0x34   : > { %1586 = vmatmul.mubr.msk.bf16.gmra.mrb[12].mxu1 %vm550_vm1, %v1650_v38 }
  0x36   : > { %628 = vmatmul.mubr.bf16.gmra.mrb[8].mxu0 %v1632_v36 }
  0x37   : > { %635 = vmatprep.mubr.bf16.mxu0 %v1635_v37 }
  0x3e   : > { %636 = vmatmul.mubr.bf16.gmra.mrb[12].mxu0 %v1637_v39 }
  0x3f   : > { %643 = vmatprep.mubr.bf16.mxu0 %v1638_v40 }
  0x46   : > { %644 = vmatmul.mubr.bf16.gmra.mrb[16].mxu0 %v1640_v41 }
  0x47   : > { %651 = vmatprep.mubr.bf16.mxu0 %v1643_v42 }
  0x4e   : > { %652 = vmatmul.mubr.bf16.gmra.mrb[20].mxu0 %v1645_v43 }
  0x4f   : > { %659 = vmatprep.mubr.bf16.mxu0 %v1646_v44 }
  0x56   : > { %660 = vmatmul.mubr.bf16.gmra.mrb[24].mxu0 %v1648_v45 }
  0x57   : > { %667 = vmatprep.mubr.bf16.mxu0 %v1651_v46 }
  0x5e   : > { %668 = vmatmul.mubr.bf16.gmra.mrb[28].mxu0 %v1653_v47 }
  0xef   : > { %v1575_v48 = vpop.f32.mrb[0].mxu1 }
  0xf0   : > { %v710_v49 = vpop.f32.mrb[1].mxu1 }
  0xf1   : > { %v1576_v50 = vpop.f32.mrb[2].mxu1 }
  0xf2   : > { %v713_v52 = vpop.f32.mrb[3].mxu1 }
  0xf7   : > { %v1579_v60 = vpop.f32.mrb[4].mxu1 }
  0xf8   : > { %v726_v63 = vpop.f32.mrb[5].mxu1 }
  0xf9   : > { %v1502_v51 = vpop.f32.mrb[0].mxu0  ;;  %v1580_v0 = vpop.f32.mrb[6].mxu1 }
  0xfa   : > { %v1503_v53 = vpop.f32.mrb[1].mxu0  ;;  %v729_v3 = vpop.f32.mrb[7].mxu1 }
  0xfb   : > { %v1504_v55 = vadd.f32 %v1503_v53, %v1502_v51  ;;  %v1505_v56 = vpop.f32.mrb[2].mxu0 }
  0xfc   : > { %v1506_v57 = vpop.f32.mrb[3].mxu0 }
  0xfd   : > { %v1507_v58 = vadd.f32 %v1506_v57, %v1505_v56  ;;  %v614_v59 = vadd.f32 %v1504_v55, %v1943_v54 }
  0xff   : > { %v1946_v61 = vadd.f32 %v710_v49, %v614_v59  ;;  %v617_v62 = vadd.f32 %v1507_v58, %v1943_v54  ;;  %v1954_v10 = vpop.f32.mrb[8].mxu1 }
 0x100   : > { %v742_v13 = vpop.f32.mrb[9].mxu1 }
 0x101   : > { %1654 = vtanh.f32 %v1946_v61  ;;  %v1950_v1 = vadd.f32 %v713_v52, %v617_v62  ;;  %v1508_v2 = vpop.f32.mrb[4].mxu0  ;;  %v1959_v14 = vpop.f32.mrb[10].mxu1 }
 0x102   : > { %v1509_v4 = vpop.f32.mrb[5].mxu0  ;;  %v745_v17 = vpop.f32.mrb[11].mxu1 }
 0x103   : > { %v1510_v5 = vadd.f32 %v1509_v4, %v1508_v2  ;;  %v1511_v6 = vpop.f32.mrb[6].mxu0  ;;  %1656 = vtanh.f32 %v1950_v1 }
 0x104   : > { %v1512_v7 = vpop.f32.mrb[7].mxu0 }
 0x105   : > { %v622_v8 = vadd.f32 %v1510_v5, %v1943_v54  ;;  %v1513_v9 = vadd.f32 %v1512_v7, %v1511_v6 }
 0x107   : > { %v1956_v11 = vadd.f32 %v1575_v48, %v622_v8  ;;  %v625_v12 = vadd.f32 %v1513_v9, %v1943_v54  ;;  %v1967_v25 = vpop.f32.mrb[12].mxu1 }
 0x108   : > { %v1972_v29 = vpop.f32.mrb[13].mxu1 }
 0x109   : > { %1658 = vtanh.f32 %v1956_v11  ;;  %v1962_v15 = vadd.f32 %v1576_v50, %v625_v12  ;;  %v1514_v16 = vpop.f32.mrb[8].mxu0  ;;  %v1975_v30 = vpop.f32.mrb[14].mxu1 }
 0x10a   : > { %v1515_v18 = vpop.f32.mrb[9].mxu0  ;;  %v1980_v33 = vpop.f32.mrb[15].mxu1 }
 0x10b   : > { %v1655_v19 = vpop.eup %1654  ;;  %v1516_v20 = vadd.f32 %v1515_v18, %v1514_v16  ;;  %v1517_v21 = vpop.f32.mrb[10].mxu0  ;;  %1660 = vtanh.f32 %v1962_v15 }
 0x10c   : > { %v1518_v22 = vpop.f32.mrb[11].mxu0  ;;  %997 = vrot.lane.b32.xlu0 %v1655_v19, %s1790_s19 }
 0x10d   : > { %v1519_v23 = vadd.f32 %v1518_v22, %v1517_v21  ;;  %v630_v24 = vadd.f32 %v1516_v20, %v1943_v54  ;;  %v1657_v26 = vpop.eup %1656 }
 0x10f   : > { %v1969_v27 = vadd.f32 %v726_v63, %v630_v24  ;;  %v633_v28 = vadd.f32 %v1519_v23, %v1943_v54 }
 0x110   : > { %999 = vrot.lane.b32.xlu0 %v1657_v26, %s1790_s19 }
 0x111   : > { %1662 = vtanh.f32 %v1969_v27  ;;  %v1978_v31 = vadd.f32 %v729_v3, %v633_v28  ;;  %v1520_v32 = vpop.f32.mrb[12].mxu0 }
 0x112   : > { %v1521_v34 = vpop.f32.mrb[13].mxu0 }
 0x113   : > { %v1659_v35 = vpop.eup %1658  ;;  %v1522_v36 = vadd.f32 %v1521_v34, %v1520_v32  ;;  %v1523_v37 = vpop.f32.mrb[14].mxu0  ;;  %1664 = vtanh.f32 %v1978_v31 }
 0x114   : > { %v1524_v38 = vpop.f32.mrb[15].mxu0  ;;  %1001 = vrot.lane.b32.xlu1 %v1659_v35, %s1790_s19 }
 0x115   : > { %v638_v39 = vadd.f32 %v1522_v36, %v1943_v54  ;;  %v1525_v40 = vadd.f32 %v1524_v38, %v1523_v37  ;;  %v1661_v41 = vpop.eup %1660 }
 0x117   : > { %v1985_v42 = vadd.f32 %v1579_v60, %v638_v39  ;;  %v641_v43 = vadd.f32 %v1525_v40, %v1943_v54  ;;  %v887_v39 = vld [vmem:[%s1913_s18 + $0x10] sm:$0xff] }
 0x118   : > { %1003 = vrot.lane.b32.xlu1 %v1661_v41, %s1790_s19  ;;  %v889_v41 = vld [vmem:[%s1913_s18 + $0x20] sm:$0xff] }
 0x119   : > { %1666 = vtanh.f32 %v1985_v42  ;;  %v1990_v44 = vadd.f32 %v1580_v0, %v641_v43  ;;  %v1526_v45 = vpop.f32.mrb[16].mxu0  ;;  %v890_v43 = vld [vmem:[%s1913_s18 + $0x28] sm:$0xff] }
 0x11a   : > { %v1527_v46 = vpop.f32.mrb[17].mxu0 }
 0x11b   : > { %v1663_v47 = vpop.eup %1662  ;;  %v1528_v48 = vadd.f32 %v1527_v46, %v1526_v45  ;;  %v1529_v49 = vpop.f32.mrb[18].mxu0  ;;  %1668 = vtanh.f32 %v1990_v44  ;;  %v891_v45 = vld [vmem:[%s1913_s18 + $0x30] sm:$0xff]  ;;  %v892_v46 = vld [vmem:[%s1913_s18 + $0x38] sm:$0xff] }
 0x11c   : > { %v1530_v50 = vpop.f32.mrb[19].mxu0  ;;  %1005 = vrot.lane.b32.xlu0 %v1663_v47, %s1790_s19  ;;  %v893_v47 = vld [vmem:[%s1913_s18 + $0x40] sm:$0xff] }
 0x11d   : > { %v1531_v51 = vadd.f32 %v1530_v50, %v1529_v49  ;;  %v646_v52 = vadd.f32 %v1528_v48, %v1943_v54  ;;  %v1665_v53 = vpop.eup %1664  ;;  %v894_v48 = vld [vmem:[%s1913_s18 + $0x48] sm:$0xff]  ;;  %v895_v49 = vld [vmem:[%s1913_s18 + $0x50] sm:$0xff]  ;;  %v896_v50 = vld [vmem:[%s1913_s18 + $0x58] sm:$0xff] }
 0x11e   : > { %1007 = vrot.lane.b32.xlu1 %v1665_v53, %s1790_s19  ;;  %v899_v53 = vld [vmem:[%s1913_s18 + $0x70] sm:$0xff] }
 0x11f   : > { %v1995_v55 = vadd.f32 %v742_v13, %v646_v52  ;;  %v649_v56 = vadd.f32 %v1531_v51, %v1943_v54  ;;  %v897_v51 = vld [vmem:[%s1913_s18 + $0x60] sm:$0xff]  ;;  %v898_v52 = vld [vmem:[%s1913_s18 + $0x68] sm:$0xff] }
 0x121   : > { %1670 = vtanh.f32 %v1995_v55  ;;  %v2000_v57 = vadd.f32 %v745_v17, %v649_v56  ;;  %v1532_v58 = vpop.f32.mrb[20].mxu0  ;;  %v1468_v56 = vmul.f32 -1.442695, %v1946_v61  ;;  %v1472_v61 = vmul.f32 -1.442695, %v1969_v27 }
 0x122   : > { %v1533_v59 = vpop.f32.mrb[21].mxu0 }
 0x123   : > { %v1667_v60 = vpop.eup %1666  ;;  %v1534_v62 = vadd.f32 %v1533_v59, %v1532_v58  ;;  %v1535_v63 = vpop.f32.mrb[22].mxu0  ;;  %1672 = vtanh.f32 %v2000_v57  ;;  %v900_v58 = vld [vmem:[%s1913_s18 + $0x78] sm:$0xff]  ;;  %v1469_v59 = vmul.f32 -1.442695, %v1950_v1 }
 0x124   : > { %v1536_v0 = vpop.f32.mrb[23].mxu0  ;;  %1009 = vrot.lane.b32.xlu0 %v1667_v60, %s1790_s19  ;;  %v1470_v60 = vmul.f32 -1.442695, %v1956_v11 }
 0x125   : > { %v654_v2 = vadd.f32 %v1534_v62, %v1943_v54  ;;  %v1537_v3 = vadd.f32 %v1536_v0, %v1535_v63  ;;  %v1669_v4 = vpop.eup %1668  ;;  %v1471_v62 = vmul.f32 -1.442695, %v1962_v15  ;;  %v1475_v15 = vmul.f32 -1.442695, %v1990_v44 }
 0x126   : > { %1011 = vrot.lane.b32.xlu1 %v1669_v4, %s1790_s19 }
 0x127   : > { %v2006_v5 = vadd.f32 %v1954_v10, %v654_v2  ;;  %v657_v6 = vadd.f32 %v1537_v3, %v1943_v54  ;;  %v1473_v3 = vmul.f32 -1.442695, %v1978_v31 }
 0x129   : > { %1674 = vtanh.f32 %v2006_v5  ;;  %v2012_v7 = vadd.f32 %v1959_v14, %v657_v6  ;;  %v1538_v8 = vpop.f32.mrb[24].mxu0  ;;  %v1474_v6 = vmul.f32 -1.442695, %v1985_v42 }
 0x12a   : > { %v1539_v9 = vpop.f32.mrb[25].mxu0 }
 0x12b   : > { %v1671_v12 = vpop.eup %1670  ;;  %v1540_v13 = vadd.f32 %v1539_v9, %v1538_v8  ;;  %v1541_v16 = vpop.f32.mrb[26].mxu0  ;;  %1676 = vtanh.f32 %v2012_v7 }
 0x12c   : > { %v1542_v17 = vpop.f32.mrb[27].mxu0  ;;  %1013 = vrot.lane.b32.xlu0 %v1671_v12, %s1790_s19  ;;  %v2079_v9 = vpop.permute.xlu0 %917 }
 0x12d   : > { %v1543_v10 = vadd.f32 %v1542_v17, %v1541_v16  ;;  %v662_v18 = vadd.f32 %v1540_v13, %v1943_v54  ;;  %v1673_v19 = vpop.eup %1672  ;;  %v1476_v16 = vmul.f32 -1.442695, %v1995_v55 }
 0x12e   : > { %1015 = vrot.lane.b32.xlu1 %v1673_v19, %s1790_s19  ;;  %v1477_v19 = vmul.f32 -1.442695, %v2000_v57 }
 0x12f   : > { %v2018_v20 = vadd.f32 %v1972_v29, %v662_v18  ;;  %v665_v14 = vadd.f32 %v1543_v10, %v1943_v54  ;;  %v2088_v18 = vpop.permute.xlu1 %919 }
 0x131   : > { %1678 = vtanh.f32 %v2018_v20  ;;  %v2024_v21 = vadd.f32 %v1980_v33, %v665_v14  ;;  %v1544_v22 = vpop.f32.mrb[28].mxu0 }
 0x132   : > { %v1545_v23 = vpop.f32.mrb[29].mxu0 }
 0x133   : > { %v1675_v24 = vpop.eup %1674  ;;  %v1546_v26 = vadd.f32 %v1545_v23, %v1544_v22  ;;  %v1547_v28 = vpop.f32.mrb[30].mxu0  ;;  %1680 = vtanh.f32 %v2024_v21 }
 0x134   : > { %v1548_v32 = vpop.f32.mrb[31].mxu0  ;;  %1017 = vrot.lane.b32.xlu0 %v1675_v24, %s1790_s19 }
 0x135   : > { %v670_v29 = vadd.f32 %v1546_v26, %v1943_v54  ;;  %v1549_v34 = vadd.f32 %v1548_v32, %v1547_v28  ;;  %v1677_v35 = vpop.eup %1676  ;;  %v1478_v28 = vmul.f32 -1.442695, %v2006_v5 }
 0x136   : > { %1019 = vrot.lane.b32.xlu1 %v1677_v35, %s1790_s19  ;;  %v1479_v35 = vmul.f32 -1.442695, %v2012_v7 }
 0x137   : > { %v2030_v36 = vadd.f32 %v1967_v25, %v670_v29  ;;  %v673_v33 = vadd.f32 %v1549_v34, %v1943_v54 }
 0x139   : > { %1682 = vtanh.f32 %v2030_v36  ;;  %v2036_v37 = vadd.f32 %v1975_v30, %v673_v33  ;;  %v888_v30 = vld [vmem:[%s1913_s18 + $0x18] sm:$0xff] }
 0x13b   : > { %v1679_v38 = vpop.eup %1678  ;;  %1684 = vtanh.f32 %v2036_v37 }
 0x13c   : > { %1021 = vrot.lane.b32.xlu0 %v1679_v38, %s1790_s19  ;;  %1686 = vpow2.f32 %v1468_v56 }
 0x13d   : > { %v1681_v25 = vpop.eup %1680  ;;  %1688 = vpow2.f32 %v1469_v59  ;;  %v1483_v59 = vmul.f32 -1.442695, %v2036_v37 }
 0x13e   : > { %1023 = vrot.lane.b32.xlu1 %v1681_v25, %s1790_s19  ;;  %1690 = vpow2.f32 %v1470_v60 }
 0x13f   : > { %1692 = vpow2.f32 %v1471_v62 }
 0x140   : > { %1694 = vpow2.f32 %v1472_v61 }
 0x143   : > { %v1683_v54 = vpop.eup %1682 }
 0x144   : > { %1025 = vrot.lane.b32.xlu0 %v1683_v54, %s1790_s19 }
 0x145   : > { %v1685_v40 = vpop.eup %1684 }
 0x146   : > { %1027 = vrot.lane.b32.xlu1 %v1685_v40, %s1790_s19  ;;  %v1687_v63 = vpop.eup %1686  ;;  %v1480_v40 = vmul.f32 -1.442695, %v2018_v20 }
 0x147   : > { %v821_v0 = vadd.f32 1.0, %v1687_v63  ;;  %v1689_v2 = vpop.eup %1688 }
 0x148   : > { %921 = vrot.lane.b32.xlu0 %v887_v39, %s1790_s19  ;;  %v822_v4 = vadd.f32 1.0, %v1689_v2  ;;  %v1691_v1 = vpop.eup %1690 }
 0x149   : > { %1696 = vrcp.f32 %v821_v0  ;;  %v823_v11 = vadd.f32 1.0, %v1691_v1  ;;  %v1693_v8 = vpop.eup %1692 }
 0x14a   : > { %923 = vrot.lane.b32.xlu1 %v888_v30, %s1790_s19  ;;  %1698 = vpow2.f32 %v1473_v3  ;;  %v824_v27 = vadd.f32 1.0, %v1693_v8  ;;  %v1695_v12 = vpop.eup %1694 }
 0x14b   : > { %1700 = vrcp.f32 %v822_v4  ;;  %v825_v10 = vadd.f32 1.0, %v1695_v12 }
 0x14c   : > { %925 = vrot.lane.b32.xlu0 %v889_v41, %s1790_s19  ;;  %1702 = vpow2.f32 %v1474_v6 }
 0x14d   : > { %1704 = vrcp.f32 %v823_v11 }
 0x14e   : > { %927 = vrot.lane.b32.xlu1 %v890_v43, %s1790_s19  ;;  %1706 = vpow2.f32 %v1475_v15 }
 0x14f   : > { %1708 = vrcp.f32 %v824_v27 }
 0x150   : > { %929 = vrot.lane.b32.xlu0 %v891_v45, %s1790_s19  ;;  %1710 = vpow2.f32 %v1476_v16 }
 0x151   : > { %1712 = vrcp.f32 %v825_v10 }
 0x152   : > { %931 = vrot.lane.b32.xlu1 %v892_v46, %s1790_s19  ;;  %1714 = vpow2.f32 %v1477_v19  ;;  %v1481_v46 = vmul.f32 -1.442695, %v2024_v21 }
 0x153   : > { %v2081_v13 = vpop.eup %1696 }
 0x154   : > { %933 = vrot.lane.b32.xlu0 %v893_v47, %s1790_s19  ;;  %v1699_v42 = vpop.eup %1698 }
 0x155   : > { %v2086_v44 = vpop.eup %1700  ;;  %v826_v22 = vadd.f32 1.0, %v1699_v42 }
 0x156   : > { %935 = vrot.lane.b32.xlu1 %v894_v48, %s1790_s19  ;;  %v1703_v55 = vpop.eup %1702 }
 0x157   : > { %v2093_v24 = vpop.eup %1704  ;;  %1716 = vrcp.f32 %v826_v22  ;;  %v827_v57 = vadd.f32 1.0, %v1703_v55 }
 0x158   : > { %937 = vrot.lane.b32.xlu0 %v895_v49, %s1790_s19  ;;  %v1707_v29 = vpop.eup %1706  ;;  %1718 = vpow2.f32 %v1478_v28 }
 0x159   : > { %v2098_v34 = vpop.eup %1708  ;;  %v828_v38 = vadd.f32 1.0, %v1707_v29  ;;  %1720 = vrcp.f32 %v827_v57 }
 0x15a   : > { %939 = vrot.lane.b32.xlu1 %v896_v50, %s1790_s19  ;;  %v1711_v54 = vpop.eup %1710  ;;  %1722 = vpow2.f32 %v1479_v35 }
 0x15b   : > { %v2103_v5 = vpop.eup %1712  ;;  %1724 = vrcp.f32 %v828_v38  ;;  %v829_v7 = vadd.f32 1.0, %v1711_v54 }
 0x15c   : > { %941 = vrot.lane.b32.xlu0 %v897_v51, %s1790_s19  ;;  %v1715_v41 = vpop.eup %1714  ;;  %1726 = vpow2.f32 %v1480_v40  ;;  %v1482_v51 = vmul.f32 -1.442695, %v2030_v36 }
 0x15d   : > { %v830_v48 = vadd.f32 1.0, %v1715_v41  ;;  %1728 = vrcp.f32 %v829_v7 }
 0x15e   : > { %943 = vrot.lane.b32.xlu1 %v898_v52, %s1790_s19  ;;  %1730 = vpow2.f32 %v1481_v46 }
 0x15f   : > { %1732 = vrcp.f32 %v830_v48 }
 0x160   : > { %945 = vrot.lane.b32.xlu0 %v899_v53, %s1790_s19  ;;  %1734 = vpow2.f32 %v1482_v51 }
 0x161   : > { %v2107_v43 = vpop.eup %1716 }
 0x162   : > { %947 = vrot.lane.b32.xlu1 %v900_v58, %s1790_s19  ;;  %v1719_v49 = vpop.eup %1718 }
 0x163   : > { %v2113_v20 = vpop.eup %1720  ;;  %v831_v56 = vadd.f32 1.0, %v1719_v49 }
 0x164   : > { %v1723_v53 = vpop.eup %1722 }
 0x165   : > { %v2117_v21 = vpop.eup %1724  ;;  %v832_v62 = vadd.f32 1.0, %v1723_v53  ;;  %1736 = vrcp.f32 %v831_v56  ;;  %v966_v56 = vmul.f32 %v2086_v44, %v2088_v18 }
 0x166   : > { %v1727_v63 = vpop.eup %1726  ;;  %1738 = vpow2.f32 %v1483_v59 }
 0x167   : > { %v2123_v36 = vpop.eup %1728  ;;  %1740 = vrcp.f32 %v832_v62  ;;  %v833_v3 = vadd.f32 1.0, %v1727_v63 }
 0x168   : > { %v1731_v2 = vpop.eup %1730 }
 0x169   : > { %v2126_v4 = vpop.eup %1732  ;;  %v834_v6 = vadd.f32 1.0, %v1731_v2  ;;  %1742 = vrcp.f32 %v833_v3 }
 0x16a   : > { %v1735_v11 = vpop.eup %1734 }
 0x16b   : > { %1744 = vrcp.f32 %v834_v6 }
 0x16f   : > { %v2131_v8 = vpop.eup %1736 }
 0x170   : > { %v1739_v12 = vpop.eup %1738 }
 0x171   : > { %v2134_v16 = vpop.eup %1740  ;;  %v836_v10 = vadd.f32 1.0, %v1739_v12 }
 0x173   : > { %v2139_v19 = vpop.eup %1742 }
 0x17e   : > { %v998_v31 = vpop.permute.xlu0 %997 }
 0x17f   : > { %v1045_v17 = vmul.f32 %v2081_v13, %v998_v31  ;;  %v835_v31 = vadd.f32 1.0, %v1735_v11 }
 0x181   : > { %1077 = vrot.lane.b32.xlu0 %v1045_v17, %s1790_s19  ;;  %1746 = vrcp.f32 %v835_v31 }
 0x182   : > { %v1000_v14 = vpop.permute.xlu0 %999  ;;  %1748 = vrcp.f32 %v836_v10 }
 0x183   : > { %v1046_v23 = vmul.f32 %v2086_v44, %v1000_v14 }
 0x185   : > { %1079 = vrot.lane.b32.xlu1 %v1046_v23, %s1790_s19  ;;  %v2142_v23 = vpop.eup %1744 }
 0x186   : > { %v1002_v26 = vpop.permute.xlu1 %1001 }
 0x187   : > { %v1047_v32 = vmul.f32 %v2093_v24, %v1002_v26 }
 0x189   : > { %1081 = vrot.lane.b32.xlu0 %v1047_v32, %s1790_s19 }
 0x18a   : > { %v1004_v33 = vpop.permute.xlu1 %1003 }
 0x18b   : > { %v1048_v25 = vmul.f32 %v2098_v34, %v1004_v33  ;;  %v2147_v28 = vpop.eup %1746 }
 0x18c   : > { %v2150_v57 = vpop.eup %1748 }
 0x18d   : > { %1083 = vrot.lane.b32.xlu1 %v1048_v25, %s1790_s19 }
 0x18e   : > { %v1006_v39 = vpop.permute.xlu0 %1005 }
 0x18f   : > { %v1049_v30 = vmul.f32 %v2103_v5, %v1006_v39 }
 0x190   : > { %v1008_v45 = vpop.permute.xlu1 %1007 }
 0x191   : > { %1085 = vrot.lane.b32.xlu0 %v1049_v30, %s1790_s19  ;;  %v1050_v47 = vmul.f32 %v2107_v43, %v1008_v45 }
 0x193   : > { %1087 = vrot.lane.b32.xlu1 %v1050_v47, %s1790_s19 }
 0x196   : > { %v1010_v50 = vpop.permute.xlu0 %1009 }
 0x197   : > { %v1051_v52 = vmul.f32 %v2113_v20, %v1010_v50  ;;  %v965_v50 = vmul.f32 %v2081_v13, %v2079_v9 }
 0x198   : > { %v1012_v58 = vpop.permute.xlu1 %1011 }
 0x199   : > { %1089 = vrot.lane.b32.xlu0 %v1051_v52, %s1790_s19  ;;  %v1052_v60 = vmul.f32 %v2117_v21, %v1012_v58 }
 0x19b   : > { %1091 = vrot.lane.b32.xlu1 %v1052_v60, %s1790_s19 }
 0x19e   : > { %v1014_v61 = vpop.permute.xlu0 %1013 }
 0x19f   : > { %v1053_v0 = vmul.f32 %v2123_v36, %v1014_v61 }
 0x1a0   : > { %v1016_v37 = vpop.permute.xlu1 %1015 }
 0x1a1   : > { %1093 = vrot.lane.b32.xlu0 %v1053_v0, %s1790_s19  ;;  %v1054_v1 = vmul.f32 %v2126_v4, %v1016_v37 }
 0x1a3   : > { %1095 = vrot.lane.b32.xlu1 %v1054_v1, %s1790_s19 }
 0x1a6   : > { %v1018_v15 = vpop.permute.xlu0 %1017 }
 0x1a7   : > { %v1055_v27 = vmul.f32 %v2131_v8, %v1018_v15 }
 0x1a8   : > { %v1020_v17 = vpop.permute.xlu1 %1019 }
 0x1a9   : > { %1097 = vrot.lane.b32.xlu0 %v1055_v27, %s1790_s19  ;;  %v1056_v42 = vmul.f32 %v2134_v16, %v1020_v17 }
 0x1ab   : > { %1099 = vrot.lane.b32.xlu1 %v1056_v42, %s1790_s19 }
 0x1ae   : > { %v1022_v14 = vpop.permute.xlu0 %1021 }
 0x1af   : > { %v1057_v22 = vmul.f32 %v2139_v19, %v1022_v14 }
 0x1b0   : > { %v1024_v55 = vpop.permute.xlu1 %1023 }
 0x1b1   : > { %1101 = vrot.lane.b32.xlu0 %v1057_v22, %s1790_s19  ;;  %v1058_v26 = vmul.f32 %v2142_v23, %v1024_v55 }
 0x1b3   : > { %1103 = vrot.lane.b32.xlu1 %v1058_v26, %s1790_s19 }
 0x1b6   : > { %v1026_v32 = vpop.permute.xlu0 %1025 }
 0x1b7   : > { %v1059_v29 = vmul.f32 %v2147_v28, %v1026_v32 }
 0x1b8   : > { %v1028_v35 = vpop.permute.xlu1 %1027 }
 0x1b9   : > { %1105 = vrot.lane.b32.xlu0 %v1059_v29, %s1790_s19  ;;  %v1060_v33 = vmul.f32 %v2150_v57, %v1028_v35 }
 0x1ba   : > { %v922_v38 = vpop.permute.xlu0 %921 }
 0x1bb   : > { %1107 = vrot.lane.b32.xlu1 %v1060_v33, %s1790_s19  ;;  %v967_v60 = vmul.f32 %v2093_v24, %v922_v38 }
 0x1bc   : > { %v924_v25 = vpop.permute.xlu1 %923 }
 0x1bd   : > { %v968_v9 = vmul.f32 %v2098_v34, %v924_v25 }
 0x1be   : > { %v926_v54 = vpop.permute.xlu0 %925 }
 0x1bf   : > { %v969_v18 = vmul.f32 %v2103_v5, %v926_v54 }
 0x1c0   : > { %v928_v39 = vpop.permute.xlu1 %927 }
 0x1c1   : > { %v970_v6 = vmul.f32 %v2107_v43, %v928_v39 }
 0x1c2   : > { %v930_v40 = vpop.permute.xlu0 %929 }
 0x1c3   : > { %v971_v12 = vmul.f32 %v2113_v20, %v930_v40 }
 0x1c4   : > { %v932_v30 = vpop.permute.xlu1 %931 }
 0x1c5   : > { %v972_v10 = vmul.f32 %v2117_v21, %v932_v30 }
 0x1c6   : > { %v934_v41 = vpop.permute.xlu0 %933 }
 0x1c7   : > { %v973_v26 = vmul.f32 %v2123_v36, %v934_v41 }
 0x1c8   : > { %v936_v7 = vpop.permute.xlu1 %935 }
 0x1c9   : > { %v974_v33 = vmul.f32 %v2126_v4, %v936_v7 }
 0x1ca   : > { %v938_v45 = vpop.permute.xlu0 %937 }
 0x1cb   : > { %v975_v39 = vmul.f32 %v2131_v8, %v938_v45 }
 0x1cc   : > { %v2155_v46 = vpop.permute.xlu1 %939 }
 0x1cd   : > { %v976_v7 = vmul.f32 %v2134_v16, %v2155_v46 }
 0x1ce   : > { %v2157_v47 = vpop.permute.xlu0 %941 }
 0x1cf   : > { %v977_v45 = vmul.f32 %v2139_v19, %v2157_v47 }
 0x1d0   : > { %v2159_v48 = vpop.permute.xlu1 %943 }
 0x1d1   : > { %v978_v46 = vmul.f32 %v2142_v23, %v2159_v48 }
 0x1d2   : > { %v2161_v49 = vpop.permute.xlu0 %945 }
 0x1d3   : > { %v979_v47 = vmul.f32 %v2147_v28, %v2161_v49 }
 0x1d4   : > { %v2165_v51 = vpop.permute.xlu1 %947 }
 0x1d5   : > { %v980_v48 = vmul.f32 %v2150_v57, %v2165_v51 }
 0x1f3   : > { %v1078_v52 = vpop.permute.xlu0 %1077 }
 0x1f4   : > { %v2167_v53 = vadd.f32 %v1078_v52, %v965_v50 }
 0x1f6   : > { %1750 = vtanh.f32 %v2167_v53 }
 0x1f7   : > { %v1080_v58 = vpop.permute.xlu1 %1079 }
 0x1f8   : > { %v2172_v59 = vadd.f32 %v1080_v58, %v966_v56 }
 0x1fa   : > { %1752 = vtanh.f32 %v2172_v59 }
 0x1fb   : > { %v1082_v62 = vpop.permute.xlu0 %1081 }
 0x1fc   : > { %v2176_v63 = vadd.f32 %v1082_v62, %v967_v60 }
 0x1fe   : > { %1754 = vtanh.f32 %v2176_v63 }
 0x1ff   : > { %v1084_v61 = vpop.permute.xlu1 %1083 }
 0x200   : > { %v1751_v0 = vpop.eup %1750  ;;  %v2180_v2 = vadd.f32 %v1084_v61, %v968_v9 }
 0x201   : > { %1173 = vrot.lane.b32.xlu0 %v1751_v0, %s1790_s19 }
 0x202   : > { %1756 = vtanh.f32 %v2180_v2 }
 0x203   : > { %v1086_v3 = vpop.permute.xlu0 %1085 }
 0x204   : > { %v1753_v37 = vpop.eup %1752  ;;  %v2185_v1 = vadd.f32 %v1086_v3, %v969_v18 }
 0x205   : > { %1175 = vrot.lane.b32.xlu1 %v1753_v37, %s1790_s19  ;;  %v1088_v11 = vpop.permute.xlu1 %1087 }
 0x206   : > { %1758 = vtanh.f32 %v2185_v1  ;;  %v2190_v15 = vadd.f32 %v1088_v11, %v970_v6 }
 0x208   : > { %v1755_v27 = vpop.eup %1754  ;;  %1760 = vtanh.f32 %v2190_v15 }
 0x209   : > { %1177 = vrot.lane.b32.xlu0 %v1755_v27, %s1790_s19 }
 0x20b   : > { %v1090_v31 = vpop.permute.xlu0 %1089 }
 0x20c   : > { %v1757_v17 = vpop.eup %1756  ;;  %v2195_v42 = vadd.f32 %v1090_v31, %v971_v12 }
 0x20d   : > { %1179 = vrot.lane.b32.xlu1 %v1757_v17, %s1790_s19  ;;  %v1092_v14 = vpop.permute.xlu1 %1091 }
 0x20e   : > { %1762 = vtanh.f32 %v2195_v42  ;;  %v2200_v22 = vadd.f32 %v1092_v14, %v972_v10 }
 0x210   : > { %v1759_v55 = vpop.eup %1758  ;;  %1764 = vtanh.f32 %v2200_v22 }
 0x211   : > { %1181 = vrot.lane.b32.xlu0 %v1759_v55, %s1790_s19 }
 0x212   : > { %v1761_v32 = vpop.eup %1760 }
 0x213   : > { %v1094_v29 = vpop.permute.xlu0 %1093  ;;  %1183 = vrot.lane.b32.xlu1 %v1761_v32, %s1790_s19 }
 0x214   : > { %v2206_v35 = vadd.f32 %v1094_v29, %v973_v26 }
 0x215   : > { %v1096_v38 = vpop.permute.xlu1 %1095 }
 0x216   : > { %1766 = vtanh.f32 %v2206_v35  ;;  %v2210_v25 = vadd.f32 %v1096_v38, %v974_v33 }
 0x218   : > { %v1763_v54 = vpop.eup %1762  ;;  %1768 = vtanh.f32 %v2210_v25 }
 0x219   : > { %1185 = vrot.lane.b32.xlu0 %v1763_v54, %s1790_s19 }
 0x21a   : > { %v1765_v40 = vpop.eup %1764 }
 0x21b   : > { %v1098_v30 = vpop.permute.xlu0 %1097  ;;  %1187 = vrot.lane.b32.xlu1 %v1765_v40, %s1790_s19 }
 0x21c   : > { %v2216_v41 = vadd.f32 %v1098_v30, %v975_v39 }
 0x21d   : > { %v1100_v50 = vpop.permute.xlu1 %1099 }
 0x21e   : > { %1770 = vtanh.f32 %v2216_v41  ;;  %v2221_v52 = vadd.f32 %v1100_v50, %v976_v7 }
 0x220   : > { %v1767_v56 = vpop.eup %1766  ;;  %1772 = vtanh.f32 %v2221_v52 }
 0x221   : > { %1189 = vrot.lane.b32.xlu0 %v1767_v56, %s1790_s19 }
 0x222   : > { %v1769_v58 = vpop.eup %1768 }
 0x223   : > { %v1102_v60 = vpop.permute.xlu0 %1101  ;;  %1191 = vrot.lane.b32.xlu1 %v1769_v58, %s1790_s19 }
 0x224   : > { %v2228_v62 = vadd.f32 %v1102_v60, %v977_v45 }
 0x225   : > { %v1104_v9 = vpop.permute.xlu1 %1103 }
 0x226   : > { %1774 = vtanh.f32 %v2228_v62  ;;  %v2233_v61 = vadd.f32 %v1104_v9, %v978_v46 }
 0x228   : > { %v1771_v0 = vpop.eup %1770  ;;  %1776 = vtanh.f32 %v2233_v61 }
 0x229   : > { %1193 = vrot.lane.b32.xlu0 %v1771_v0, %s1790_s19 }
 0x22a   : > { %v1773_v18 = vpop.eup %1772 }
 0x22b   : > { %v1106_v3 = vpop.permute.xlu0 %1105  ;;  %1195 = vrot.lane.b32.xlu1 %v1773_v18, %s1790_s19 }
 0x22c   : > { %v2240_v37 = vadd.f32 %v1106_v3, %v979_v47 }
 0x22d   : > { %v1108_v6 = vpop.permute.xlu1 %1107 }
 0x22e   : > { %1778 = vtanh.f32 %v2240_v37  ;;  %v2245_v11 = vadd.f32 %v1108_v6, %v980_v48 }
 0x230   : > { %v1775_v27 = vpop.eup %1774  ;;  %1780 = vtanh.f32 %v2245_v11 }
 0x231   : > { %1197 = vrot.lane.b32.xlu0 %v1775_v27, %s1790_s19 }
 0x232   : > { %v1777_v49 = vpop.eup %1776 }
 0x233   : > { %1199 = vrot.lane.b32.xlu1 %v1777_v49, %s1790_s19 }
 0x238   : > { %v1779_v12 = vpop.eup %1778 }
 0x239   : > { %1201 = vrot.lane.b32.xlu0 %v1779_v12, %s1790_s19 }
 0x23a   : > { %v1781_v31 = vpop.eup %1780 }
 0x23b   : > { %1203 = vrot.lane.b32.xlu1 %v1781_v31, %s1790_s19 }
 0x273   : > { %v1174_v51 = vpop.permute.xlu0 %1173 }
 0x274   : > { %v1221_v17 = vmul.f32 %v2081_v13, %v1174_v51 }
 0x276   : > { %1253 = vrot.lane.b32.xlu0 %v1221_v17, %s1791_s22 }
 0x277   : > { %v1176_v10 = vpop.permute.xlu1 %1175 }
 0x278   : > { %v1222_v14 = vmul.f32 %v2086_v44, %v1176_v10 }
 0x27a   : > { %1255 = vrot.lane.b32.xlu1 %v1222_v14, %s1791_s22 }
 0x27b   : > { %v1178_v55 = vpop.permute.xlu0 %1177 }
 0x27c   : > { %v1223_v26 = vmul.f32 %v2093_v24, %v1178_v55 }
 0x27e   : > { %1257 = vrot.lane.b32.xlu0 %v1223_v26, %s1791_s22 }
 0x27f   : > { %v1180_v32 = vpop.permute.xlu1 %1179 }
 0x280   : > { %v1224_v29 = vmul.f32 %v2098_v34, %v1180_v32 }
 0x282   : > { %1259 = vrot.lane.b32.xlu1 %v1224_v29, %s1791_s22 }
 0x283   : > { %v1182_v33 = vpop.permute.xlu0 %1181 }
 0x284   : > { %v1225_v13 = vmul.f32 %v2103_v5, %v1182_v33 }
 0x285   : > { %v1184_v38 = vpop.permute.xlu1 %1183 }
 0x286   : > { %1261 = vrot.lane.b32.xlu0 %v1225_v13, %s1791_s22  ;;  %v1226_v44 = vmul.f32 %v2107_v43, %v1184_v38 }
 0x288   : > { %1263 = vrot.lane.b32.xlu1 %v1226_v44, %s1791_s22 }
 0x28b   : > { %v1186_v54 = vpop.permute.xlu0 %1185 }
 0x28c   : > { %v1227_v24 = vmul.f32 %v2113_v20, %v1186_v54 }
 0x28d   : > { %v1188_v39 = vpop.permute.xlu1 %1187 }
 0x28e   : > { %1265 = vrot.lane.b32.xlu0 %v1227_v24, %s1791_s22  ;;  %v1228_v34 = vmul.f32 %v2117_v21, %v1188_v39 }
 0x290   : > { %1267 = vrot.lane.b32.xlu1 %v1228_v34, %s1791_s22 }
 0x293   : > { %v1190_v40 = vpop.permute.xlu0 %1189 }
 0x294   : > { %v1229_v5 = vmul.f32 %v2123_v36, %v1190_v40 }
 0x295   : > { %v1192_v30 = vpop.permute.xlu1 %1191 }
 0x296   : > { %1269 = vrot.lane.b32.xlu0 %v1229_v5, %s1791_s22  ;;  %v1230_v43 = vmul.f32 %v2126_v4, %v1192_v30 }
 0x298   : > { %1271 = vrot.lane.b32.xlu1 %v1230_v43, %s1791_s22 }
 0x29b   : > { %v1194_v7 = vpop.permute.xlu0 %1193 }
 0x29c   : > { %v1231_v20 = vmul.f32 %v2131_v8, %v1194_v7 }
 0x29d   : > { %v1196_v50 = vpop.permute.xlu1 %1195 }
 0x29e   : > { %1273 = vrot.lane.b32.xlu0 %v1231_v20, %s1791_s22  ;;  %v1232_v21 = vmul.f32 %v2134_v16, %v1196_v50 }
 0x2a0   : > { %1275 = vrot.lane.b32.xlu1 %v1232_v21, %s1791_s22 }
 0x2a3   : > { %v1198_v56 = vpop.permute.xlu0 %1197 }
 0x2a4   : > { %v1233_v36 = vmul.f32 %v2139_v19, %v1198_v56 }
 0x2a5   : > { %v1200_v45 = vpop.permute.xlu1 %1199 }
 0x2a6   : > { %1277 = vrot.lane.b32.xlu0 %v1233_v36, %s1791_s22  ;;  %v1234_v4 = vmul.f32 %v2142_v23, %v1200_v45 }
 0x2a8   : > { %1279 = vrot.lane.b32.xlu1 %v1234_v4, %s1791_s22 }
 0x2ab   : > { %v1202_v58 = vpop.permute.xlu0 %1201 }
 0x2ac   : > { %v1235_v8 = vmul.f32 %v2147_v28, %v1202_v58 }
 0x2ad   : > { %v1204_v60 = vpop.permute.xlu1 %1203 }
 0x2ae   : > { %1281 = vrot.lane.b32.xlu0 %v1235_v8, %s1791_s22  ;;  %v1236_v16 = vmul.f32 %v2150_v57, %v1204_v60 }
 0x2b0   : > { %1283 = vrot.lane.b32.xlu1 %v1236_v16, %s1791_s22 }
 0x2e8   : > { %v1254_v19 = vpop.permute.xlu0 %1253 }
 0x2e9   : > { %v1302_v23 = vsel %vm1301_vm2, %v1254_v19, %v2167_v53 }
 0x2ea   : > { %1319 = vst.msk [vmem:[%s2289_s26] sm:$0xff] %vm1318_vm3, %v1302_v23 }
 0x2ec   : > { %v1256_v28 = vpop.permute.xlu1 %1255 }
 0x2ed   : > { %v1303_v57 = vsel %vm1301_vm2, %v1256_v28, %v2172_v59 }
 0x2ee   : > { %1320 = vst.msk [vmem:[%s2289_s26 + $0x8] sm:$0xff] %vm1318_vm3, %v1303_v57 }
 0x2f0   : > { %v1258_v46 = vpop.permute.xlu0 %1257 }
 0x2f1   : > { %v1304_v9 = vsel %vm1301_vm2, %v1258_v46, %v2176_v63 }
 0x2f2   : > { %1321 = vst.msk [vmem:[%s2289_s26 + $0x10] sm:$0xff] %vm1318_vm3, %v1304_v9 }
 0x2f4   : > { %v1260_v0 = vpop.permute.xlu1 %1259 }
 0x2f5   : > { %v1305_v53 = vsel %vm1301_vm2, %v1260_v0, %v2180_v2 }
 0x2f6   : > { %1322 = vst.msk [vmem:[%s2289_s26 + $0x18] sm:$0xff] %vm1318_vm3, %v1305_v53 }
 0x2f8   : > { %v1262_v47 = vpop.permute.xlu0 %1261 }
 0x2f9   : > { %v1306_v59 = vsel %vm1301_vm2, %v1262_v47, %v2185_v1 }
 0x2fa   : > { %1323 = vst.msk [vmem:[%s2289_s26 + $0x20] sm:$0xff] %vm1318_vm3, %v1306_v59  ;;  %v1264_v18 = vpop.permute.xlu1 %1263 }
 0x2fb   : > { %v1307_v63 = vsel %vm1301_vm2, %v1264_v18, %v2190_v15 }
 0x2fc   : > { %1324 = vst.msk [vmem:[%s2289_s26 + $0x28] sm:$0xff] %vm1318_vm3, %v1307_v63 }
 0x300   : > { %v1266_v3 = vpop.permute.xlu0 %1265 }
 0x301   : > { %v1308_v2 = vsel %vm1301_vm2, %v1266_v3, %v2195_v42 }
 0x302   : > { %1325 = vst.msk [vmem:[%s2289_s26 + $0x30] sm:$0xff] %vm1318_vm3, %v1308_v2  ;;  %v1268_v48 = vpop.permute.xlu1 %1267 }
 0x303   : > { %v1309_v1 = vsel %vm1301_vm2, %v1268_v48, %v2200_v22 }
 0x304   : > { %1326 = vst.msk [vmem:[%s2289_s26 + $0x38] sm:$0xff] %vm1318_vm3, %v1309_v1 }
 0x308   : > { %v1270_v6 = vpop.permute.xlu0 %1269 }
 0x309   : > { %v1310_v15 = vsel %vm1301_vm2, %v1270_v6, %v2206_v35 }
 0x30a   : > { %1327 = vst.msk [vmem:[%s2289_s26 + $0x40] sm:$0xff] %vm1318_vm3, %v1310_v15  ;;  %v1272_v27 = vpop.permute.xlu1 %1271 }
 0x30b   : > { %v1311_v42 = vsel %vm1301_vm2, %v1272_v27, %v2210_v25 }
 0x30c   : > { %1328 = vst.msk [vmem:[%s2289_s26 + $0x48] sm:$0xff] %vm1318_vm3, %v1311_v42 }
 0x310   : > { %v1274_v49 = vpop.permute.xlu0 %1273 }
 0x311   : > { %v1312_v22 = vsel %vm1301_vm2, %v1274_v49, %v2216_v41 }
 0x312   : > { %1329 = vst.msk [vmem:[%s2289_s26 + $0x50] sm:$0xff] %vm1318_vm3, %v1312_v22  ;;  %v1276_v12 = vpop.permute.xlu1 %1275 }
 0x313   : > { %v1313_v35 = vsel %vm1301_vm2, %v1276_v12, %v2221_v52 }
 0x314   : > { %1330 = vst.msk [vmem:[%s2289_s26 + $0x58] sm:$0xff] %vm1318_vm3, %v1313_v35 }
 0x318   : > { %v1278_v31 = vpop.permute.xlu0 %1277 }
 0x319   : > { %v1314_v25 = vsel %vm1301_vm2, %v1278_v31, %v2228_v62 }
 0x31a   : > { %1331 = vst.msk [vmem:[%s2289_s26 + $0x60] sm:$0xff] %vm1318_vm3, %v1314_v25  ;;  %v1280_v51 = vpop.permute.xlu1 %1279 }
 0x31b   : > { %v1315_v17 = vsel %vm1301_vm2, %v1280_v51, %v2233_v61 }
 0x31c   : > { %1332 = vst.msk [vmem:[%s2289_s26 + $0x68] sm:$0xff] %vm1318_vm3, %v1315_v17 }
 0x320   : > { %v1282_v41 = vpop.permute.xlu0 %1281 }
 0x321   : > { %v1316_v10 = vsel %vm1301_vm2, %v1282_v41, %v2240_v37 }
 0x322   : > { %1333 = vst.msk [vmem:[%s2289_s26 + $0x70] sm:$0xff] %vm1318_vm3, %v1316_v10  ;;  %v1284_v52 = vpop.permute.xlu1 %1283 }
 0x323   : > { %v1317_v14 = vsel %vm1301_vm2, %v1284_v52, %v2245_v11 }
 0x324   : > { %1334 = vst.msk [vmem:[%s2289_s26 + $0x78] sm:$0xff] %vm1318_vm3, %v1317_v14 }
 0x325 PF: > { %s14_s15 = sadd.s32 1, %s1788_s15  }
 0x326   : > { %p11_p4 = scmp.ge.s32.totalorder %s14_s15, 6  }
 0x328   :  { %13 = sbr.rel (!%p11_p4) target bundleno = 1 (0x1), region = 69 }

</bundles_post_ra>
